<compile_context>
chip_gen: v7x
topology: tpu7x:2x2x1
jax: 0.10.0
libtpu: 0.0.40
codegen_flags: <defaults>
</compile_context>

<pallas_src>
import functools

import jax
import jax.numpy as jnp
from jax import lax
from jax.experimental import pallas as pl
from jax.experimental.pallas import tpu as pltpu


# --------------------------------------------------------------------- kernel
def _fused_attention_kernel(x_ref, xq_ref, wqkv_ref, wo_ref, o_ref, *, c,
                            inv_sqrt_c):
    """One (batch, query-tile) grid step; all intermediates stay in VMEM."""
    x = x_ref[0]           # (C, N)   full spatial extent (needed for K / V)
    xq = xq_ref[0]         # (C, TQ)  this step's query columns
    w = wqkv_ref[...]      # (3C, C)  stacked [Wq; Wk; Wv]

    # 1x1-conv projections on the MXU (channel-first: W @ X).
    q = jnp.dot(w[:c], xq, preferred_element_type=jnp.float32)        # (C, TQ)
    kv = jnp.dot(w[c:], x, preferred_element_type=jnp.float32)        # (2C, N)
    k = kv[:c]                                                        # (C, N)
    v = kv[c:]                                                        # (C, N)

    # Scores stored transposed: s_t[j, i] = (Q^T K)[i, j] / sqrt(C).
    s_t = lax.dot_general(k, q, (((0,), (0,)), ((), ())),
                          preferred_element_type=jnp.float32) * inv_sqrt_c

    # Softmax over the key axis (axis 0 here == dim=-1 of the reference).
    m = jnp.max(s_t, axis=0, keepdims=True)             # (1, TQ)
    p = jnp.exp(s_t - m)                                # (N, TQ) unnormalized
    denom = jnp.sum(p, axis=0, keepdims=True)           # (1, TQ)

    # acc[ch, i] = sum_j V[ch, j] * p[j, i]    (== V @ A^T before normalizing)
    acc = jnp.dot(v, p, preferred_element_type=jnp.float32)           # (C, TQ)

    # fc_out 1x1 conv, then per-query normalization via EUP reciprocal.
    out = jnp.dot(wo_ref[...], acc, preferred_element_type=jnp.float32)
    o_ref[0] = out * pl.reciprocal(denom, approx=True)                # (C, TQ)


# -------------------------------------------------------------------- wrapper
def fused_self_attention(x_cn, wqkv, wo, *, tq=128):
    """x_cn: (B, C, N) channel-first, spatially flattened.  Returns (B, C, N)."""
    B, C, N = x_cn.shape
    if N % tq != 0:
        tq = N              # single query tile per batch for unaligned N
    n_q = N // tq

    kern = functools.partial(_fused_attention_kernel, c=C,
                             inv_sqrt_c=1.0 / (C ** 0.5))
    return pl.pallas_call(
        kern,
        out_shape=jax.ShapeDtypeStruct((B, C, N), jnp.float32),
        grid=(B, n_q),
        in_specs=[
            pl.BlockSpec((1, C, N), lambda b, qi: (b, 0, 0)),    # full x (K/V)
            pl.BlockSpec((1, C, tq), lambda b, qi: (b, 0, qi)),  # query columns
            pl.BlockSpec((3 * C, C), lambda b, qi: (0, 0)),      # [Wq;Wk;Wv]
            pl.BlockSpec((C, C), lambda b, qi: (0, 0)),          # Wo
        ],
        out_specs=pl.BlockSpec((1, C, tq), lambda b, qi: (b, 0, qi)),
        compiler_params=pltpu.CompilerParams(
            dimension_semantics=("parallel", "parallel"),
            vmem_limit_bytes=32 * 1024 * 1024,
        ),
    )(x_cn, x_cn, wqkv, wo)


@jax.jit
def self_attention_layer(params, x_nchw):
    """Forward pass of the PyTorch Self_Attention_layer. NCHW in, NCHW out."""
    B, C, H, W = x_nchw.shape
    x_cn = x_nchw.reshape(B, C, H * W).astype(jnp.float32)   # reshape only
    wqkv = jnp.concatenate(
        [params["wq"][:, :, 0, 0],
         params["wk"][:, :, 0, 0],
         params["wv"][:, :, 0, 0]], axis=0)                  # (3C, C)
    wo = params["wo"][:, :, 0, 0]                            # (C, C)
    out = fused_self_attention(x_cn, wqkv, wo)
    return out.reshape(B, C, H, W)


# ---------------------------------------------------------- pure-JAX reference
def reference(params, x):
    b, c, h, w = x.shape

    def conv1(t, wgt):
        return jnp.einsum("oi,bihw->bohw", wgt[:, :, 0, 0], t)

    Q = conv1(x, params["wq"]).reshape(b, c, -1)
    K = conv1(x, params["wk"]).reshape(b, c, -1)
    V = conv1(x, params["wv"]).reshape(b, c, -1)
    att = jax.nn.softmax(jnp.einsum("bci,bcj->bij", Q, K) / (c ** 0.5), axis=-1)
    out = jnp.einsum("bcj,bij->bci", V, att).reshape(b, c, h, w)
    return conv1(out, params["wo"])


# -------------------------------------------------------- deterministic params
def init_params(key, c):
    ks = jax.random.split(key, 4)
    bound = 1.0 / (c ** 0.5)      # PyTorch Conv2d default init, fan_in = c*1*1

    def u(k):
        return jax.random.uniform(k, (c, c, 1, 1), jnp.float32, -bound, bound)

    return dict(wq=u(ks[0]), wk=u(ks[1]), wv=u(ks[2]), wo=u(ks[3]))


if __name__ == "__main__":
    key = jax.random.PRNGKey(0)
    kx, kp = jax.random.split(key)
    B, C, H, W = 2, 8, 16, 16

    x = jax.random.normal(kx, (B, C, H, W), jnp.float32)
    params = init_params(kp, C)

    out = jax.block_until_ready(self_attention_layer(params, x))
    assert out.shape == (B, C, H, W), out.shape

    ref = reference(params, x)
    max_err = float(jnp.max(jnp.abs(out - ref)))
    assert jnp.allclose(out, ref, atol=2e-3, rtol=2e-3), f"max_err={max_err}"

    print("KERNEL_OK")
</pallas_src>

<mosaic_0001>
module attributes {stable_mosaic.version = 11 : i64} {
  func.func @_fused_attention_kernel(%arg0: i32, %arg1: i32, %arg2: memref<1x8x256xf32, #tpu.memory_space<vmem>>, %arg3: memref<1x8x128xf32, #tpu.memory_space<vmem>>, %arg4: memref<24x8xf32, #tpu.memory_space<vmem>>, %arg5: memref<8x8xf32, #tpu.memory_space<vmem>>, %arg6: memref<1x8x128xf32, #tpu.memory_space<vmem>>) attributes {dimension_semantics = [#tpu.dimension_semantics<parallel>, #tpu.dimension_semantics<parallel>], iteration_bounds = array<i64: 2, 2>, scalar_prefetch = 0 : i64, scratch_operands = 0 : i64, tpu.core_type = #tpu.core_type<tc>, window_params = [{transform_indices = @transform_0, window_bounds = array<i64: 1, 8, 256>}, {transform_indices = @transform_1, window_bounds = array<i64: 1, 8, 128>}, {pipeline_mode = #tpu.pipeline_mode<synchronous>, transform_indices = @transform_2, window_bounds = array<i64: 24, 8>}, {pipeline_mode = #tpu.pipeline_mode<synchronous>, transform_indices = @transform_3, window_bounds = array<i64: 8, 8>}, {transform_indices = @transform_4, window_bounds = array<i64: 1, 8, 128>}]} {
    %c0 = arith.constant 0 : index
    %c0_0 = arith.constant 0 : index
    %c0_1 = arith.constant 0 : index
    %0 = vector.load %arg2[%c0, %c0_0, %c0_1] : memref<1x8x256xf32, #tpu.memory_space<vmem>>, vector<1x8x256xf32>
    %1 = vector.shape_cast %0 : vector<1x8x256xf32> to vector<8x256xf32>
    %c0_2 = arith.constant 0 : index
    %c0_3 = arith.constant 0 : index
    %c0_4 = arith.constant 0 : index
    %2 = vector.load %arg3[%c0_2, %c0_3, %c0_4] : memref<1x8x128xf32, #tpu.memory_space<vmem>>, vector<1x8x128xf32>
    %3 = vector.shape_cast %2 : vector<1x8x128xf32> to vector<8x128xf32>
    %c0_5 = arith.constant 0 : index
    %c0_6 = arith.constant 0 : index
    %4 = vector.load %arg4[%c0_5, %c0_6] : memref<24x8xf32, #tpu.memory_space<vmem>>, vector<24x8xf32>
    %5 = vector.extract_strided_slice %4 {offsets = [0, 0], sizes = [8, 8], strides = [1, 1]} : vector<24x8xf32> to vector<8x8xf32>
    %cst = arith.constant dense<0.000000e+00> : vector<8x128xf32>
    %6 = tpu.matmul %5, %3, %cst {dimension_numbers = #tpu.dot_dimension_numbers<[1], [0], [0], [1], [0, 0, 1, 1], [], []>} : vector<8x8xf32>, vector<8x128xf32>, vector<8x128xf32> -> vector<8x128xf32>
    %7 = vector.extract_strided_slice %4 {offsets = [8, 0], sizes = [16, 8], strides = [1, 1]} : vector<24x8xf32> to vector<16x8xf32>
    %cst_7 = arith.constant dense<0.000000e+00> : vector<16x256xf32>
    %8 = tpu.matmul %7, %1, %cst_7 {dimension_numbers = #tpu.dot_dimension_numbers<[1], [0], [0], [1], [0, 0, 1, 1], [], []>} : vector<16x8xf32>, vector<8x256xf32>, vector<16x256xf32> -> vector<16x256xf32>
    %9 = vector.extract_strided_slice %8 {offsets = [0, 0], sizes = [8, 256], strides = [1, 1]} : vector<16x256xf32> to vector<8x256xf32>
    %10 = vector.extract_strided_slice %8 {offsets = [8, 0], sizes = [8, 256], strides = [1, 1]} : vector<16x256xf32> to vector<8x256xf32>
    %cst_8 = arith.constant dense<0.000000e+00> : vector<256x128xf32>
    %11 = tpu.matmul %9, %6, %cst_8 {dimension_numbers = #tpu.dot_dimension_numbers<[0], [0], [1], [1], [0, 1, 1, 1], [], []>} : vector<8x256xf32>, vector<8x128xf32>, vector<256x128xf32> -> vector<256x128xf32>
    %cst_9 = arith.constant 0.353553385 : f32
    %12 = vector.broadcast %cst_9 : f32 to vector<256x128xf32>
    %13 = arith.mulf %11, %12 : vector<256x128xf32>
    %cst_10 = arith.constant dense<0xFF800000> : vector<128xf32>
    %14 = vector.multi_reduction <maximumf>, %13, %cst_10 [0] : vector<256x128xf32> to vector<128xf32>
    %15 = vector.shape_cast %14 : vector<128xf32> to vector<1x128xf32>
    %16 = vector.broadcast %15 : vector<1x128xf32> to vector<256x128xf32>
    %17 = arith.subf %13, %16 : vector<256x128xf32>
    %18 = math.exp %17 : vector<256x128xf32>
    %cst_11 = arith.constant dense<0.000000e+00> : vector<128xf32>
    %19 = vector.multi_reduction <add>, %18, %cst_11 [0] : vector<256x128xf32> to vector<128xf32>
    %20 = vector.shape_cast %19 : vector<128xf32> to vector<1x128xf32>
    %cst_12 = arith.constant dense<0.000000e+00> : vector<8x128xf32>
    %21 = tpu.matmul %10, %18, %cst_12 {dimension_numbers = #tpu.dot_dimension_numbers<[1], [0], [0], [1], [0, 0, 1, 1], [], []>} : vector<8x256xf32>, vector<256x128xf32>, vector<8x128xf32> -> vector<8x128xf32>
    %c0_13 = arith.constant 0 : index
    %c0_14 = arith.constant 0 : index
    %22 = vector.load %arg5[%c0_13, %c0_14] : memref<8x8xf32, #tpu.memory_space<vmem>>, vector<8x8xf32>
    %cst_15 = arith.constant dense<0.000000e+00> : vector<8x128xf32>
    %23 = tpu.matmul %22, %21, %cst_15 {dimension_numbers = #tpu.dot_dimension_numbers<[1], [0], [0], [1], [0, 0, 1, 1], [], []>} : vector<8x8xf32>, vector<8x128xf32>, vector<8x128xf32> -> vector<8x128xf32>
    %24 = tpu.reciprocal %20 {approx = true} : vector<1x128xf32> -> vector<1x128xf32>
    %25 = vector.broadcast %24 : vector<1x128xf32> to vector<8x128xf32>
    %26 = arith.mulf %23, %25 : vector<8x128xf32>
    %c0_16 = arith.constant 0 : index
    %c0_17 = arith.constant 0 : index
    %c0_18 = arith.constant 0 : index
    %27 = vector.load %arg6[%c0_16, %c0_17, %c0_18] : memref<1x8x128xf32, #tpu.memory_space<vmem>>, vector<1x8x128xf32>
    %28 = vector.shape_cast %27 : vector<1x8x128xf32> to vector<8x128xf32>
    %29 = vector.shape_cast %26 : vector<8x128xf32> to vector<1x8x128xf32>
    tpu.vector_store %arg6[%c0_16, %c0_17, %c0_18], %29 {strides = array<i32>} : memref<1x8x128xf32, #tpu.memory_space<vmem>>, vector<1x8x128xf32>,
    return
  }
  func.func @transform_0(%arg0: i32, %arg1: i32) -> (i32, i32, i32) {
    %c0_i32 = arith.constant 0 : i32
    %c0_i32_0 = arith.constant 0 : i32
    %c0_i32_1 = arith.constant 0 : i32
    return %arg0, %c0_i32, %c0_i32_0 : i32, i32, i32
  }
  func.func @transform_1(%arg0: i32, %arg1: i32) -> (i32, i32, i32) {
    %c0_i32 = arith.constant 0 : i32
    %c0_i32_0 = arith.constant 0 : i32
    return %arg0, %c0_i32, %arg1 : i32, i32, i32
  }
  func.func @transform_2(%arg0: i32, %arg1: i32) -> (i32, i32) {
    %c0_i32 = arith.constant 0 : i32
    %c0_i32_0 = arith.constant 0 : i32
    %c0_i32_1 = arith.constant 0 : i32
    return %c0_i32, %c0_i32_0 : i32, i32
  }
  func.func @transform_3(%arg0: i32, %arg1: i32) -> (i32, i32) {
    %c0_i32 = arith.constant 0 : i32
    %c0_i32_0 = arith.constant 0 : i32
    %c0_i32_1 = arith.constant 0 : i32
    return %c0_i32, %c0_i32_0 : i32, i32
  }
  func.func @transform_4(%arg0: i32, %arg1: i32) -> (i32, i32, i32) {
    %c0_i32 = arith.constant 0 : i32
    %c0_i32_0 = arith.constant 0 : i32
    return %arg0, %c0_i32, %arg1 : i32, i32, i32
  }
}

</mosaic_0001>

<bundles_post_ra>
// kernel: self_attention_layer.1
= control target key start
LH: loop header
LB: loop body
LE: loop exit
PB: predicated region body
PF: predicated region fallthrough
CT: control target
= control target key end

     0   :  { %s1633_s15 = smov 0   ;;  %s1635_s16 = smov 0   ;;  %s2033_s0 = inlined_call_operand.vmem [shape: f32[2,8,256], index: 0, kind: input, shape index: {}, may-alias: {0,1}]   ;;  %s2034_s1 = inlined_call_operand.vmem [shape: f32[2,8,256], index: 1, kind: input, shape index: {}, may-alias: {0,1}]   ;;  %s2035_s2 = inlined_call_operand.vmem [shape: f32[24,8], index: 2, kind: input, shape index: {}]   ;;  %s2036_s3 = inlined_call_operand.vmem [shape: f32[8,8], index: 3, kind: input, shape index: {}]   ;;  %s2037_s4 = inlined_call_operand.vmem [shape: f32[2,8,256], index: 4, kind: output, shape index: {}]  }
   0x1   :  { %s1637_s17 = smov 0   ;;  %s1639_s18 = smov 0  }
   0x2   :  { %s1641_s19 = smov 0  }
   0x3 LB: > { %s23_s20 = sadd.s32 1, %s1596_s17  ;;  %s26_s21 = sadd.s32 1, %s1600_s18  ;;  %s1604_s19 = sphi %s1641_s19, %s14_s19   ;;  %s1600_s18 = sphi %s1639_s18, %s2041_s18   ;;  %s1596_s17 = sphi %s1637_s17, %s2040_s17   ;;  %s1592_s16 = sphi %s1635_s16, %s2039_s16   ;;  %s1588_s15 = sphi %s1633_s15, %s2038_s15  }
   0x4   : > { %p24_p0 = scmp.ge.s32.totalorder %s23_s20, 2  ;;  %p1248_p1 = scmp.ge.s32.totalorder %s1604_s19, 1 }
   0x5   : > { %p191_p2 = scmp.lt.s32.totalorder %s1604_s19, 5 }
   0x6   : > { %s2043_s20 = smov (%p24_p0, %s23_s20), 0  ;;  %s2045_s21 = smov (!%p24_p0, %s26_s21), %s1600_s18 }
   0x7   : > { %p192_p3 = pnand %p1248_p1, %p191_p2  ;;  %p28_p4 = scmp.ge.s32.totalorder %s2045_s21, 2 }
   0x8   : > { %p228_p5 = scmp.lt.s32.totalorder (!%p192_p3), %s1592_s16, 1  ;;  %p235_p6 = scmp.lt.s32.totalorder (!%p192_p3), %s1588_s15, 1  ;;  %v1606_v0 = vmov (!%p192_p3), 0.0   ;;  %vm1607_vm0 = vmmov (!%p192_p3), 0   ;;  %v252_v1 = vld [vmem:[%s2035_s2] sm:$0xff] (!%p192_p3)  ;;  %vm255_vm1 = vcmask (!%p192_p3), 64512  }
   0x9   : > { %s2047_s21 = smov (%p28_p4, %s2045_s21), 0  ;;  %195 = sbr.rel (%p192_p3) target bundleno = 1228 (0x4cc), region = 36 }
   0xa   : > { %1366 = vmatprep.subr.mxu1 (!%p192_p3), %v1606_v0  ;;  %1368 = vmatprep.mubr.msk.f32.mxu1 (!%p192_p3), %vm1607_vm0, %v1606_v0  ;;  %v253_v5 = vld [vmem:[%s2035_s2 + $0x8] sm:$0xff] (!%p192_p3)  ;;  %v254_v10 = vld [vmem:[%s2035_s2 + $0x10] sm:$0xff] (!%p192_p3) }
  0x10   : > { %s2049_s16 = smov (!%p228_p5, %s1592_s16), 1  ;;  %s2051_s15 = smov (!%p235_p6, %s1588_s15), 1 }
  0x11   : > { %s1251_s22 = sshll.u32 %s2049_s16, 1  ;;  %s1293_s23 = sshll.u32 %s2049_s16, 4 }
  0x12   : > { %s1666_s24 = sadd.s32 %s1251_s22, %s2051_s15  ;;  %s232_s27 = scalar_lea.vmem %s2033_s0, %s1293_s23 }
  0x13   : > { %s1252_s28 = sshll.u32 %s1666_s24, 3  ;;  %v250_v2 = vld [vmem:[%s232_s27 + $0x8] sm:$0xff]  ;;  %v249_v4 = vld [vmem:[%s232_s27] sm:$0xff] }
  0x14   : > { %s240_s5 = scalar_lea.vmem %s2034_s1, %s1252_s28  ;;  %s248_s16 = scalar_lea.vmem %s2037_s4, %s1252_s28 }
  0x15   : > { %v251_v3 = vld [vmem:[%s240_s5] sm:$0xff] }
  0x16   : > { %1367 = vmatpush3.msra.mxu1 %v251_v3 }
  0x17   : > { %1369 = vmatmul.mubr.msk.f32.vlgmr.msra.gmra.mrb[0].mxu1 %vm255_vm1, %v252_v1  ;;  %335 = vmatprep.subr.mxu1 %v250_v2 }
  0x18   : > { %336 = vmatpush1.msra.mxu1 %v249_v4  ;;  %399 = vmatprep.mubr.f32.mxu1 %v1606_v0 }
  0x1b   : > { %1256 = vmatmul.mubr.msk.f32.vlgmr.msra.gmra.mrb[2].mxu1 %vm255_vm1, %v253_v5 }
  0x1c   : > { %405 = vmatprep.mubr.f32.mxu1 %v1606_v0 }
  0x1f   : > { %1257 = vmatmul.mubr.msk.f32.gmra.mrb[4].mxu1 %vm255_vm1, %v254_v10 }
  0xea   : > { %v325_v6 = vpop.f32.mrb[0].mxu1 }
  0xeb   : > { %v1370_v7 = vpop.f32.mrb[1].mxu1  ;;  %1371 = vmatprep.subr.mxu0 %v325_v6 }
  0xec   : > { %1372 = vmatpush3.msra.mxu0 %v325_v6 }
  0xee   : > { %v401_v8 = vpop.f32.mrb[2].mxu1 }
  0xef   : > { %412 = vxpose.xlu0.b32.start.end [1/1] (short) %v401_v8, 128  ;;  %v403_v9 = vpop.f32.mrb[3].mxu1 }
 0x12c   : > { %444 = vxpose.xlu0.b32.start.end [1/1] (short) %v403_v9, 128 }
 0x16f   : > { %v428_v11 = vpop.trf.xlu0 }
 0x170   : > { %1373 = vmatprep.mubr.msk.f32.mxu0 %vm255_vm1, %v428_v11 }
 0x173   : > { %v429_v12 = vpop.trf.xlu0 }
 0x174   : > { %1374 = vmatmul.mubr.msk.f32.vlgmr.msra.gmra.mrb[0].mxu0 %vm255_vm1, %v429_v12 }
 0x177   : > { %v430_v13 = vpop.trf.xlu0 }
 0x178   : > { %1376 = vmatprep.mubr.msk.f32.mxu0 %vm255_vm1, %v430_v13 }
 0x17b   : > { %v431_v14 = vpop.trf.xlu0 }
 0x17c   : > { %1377 = vmatmul.mubr.msk.f32.gmra.mrb[2].mxu0 %vm255_vm1, %v431_v14 }
 0x17f   : > { %v432_v15 = vpop.trf.xlu0 }
 0x180   : > { %1379 = vmatprep.mubr.msk.f32.mxu0 %vm255_vm1, %v432_v15 }
 0x183   : > { %v433_v16 = vpop.trf.xlu0 }
 0x184   : > { %1380 = vmatmul.mubr.msk.f32.gmra.mrb[4].mxu0 %vm255_vm1, %v433_v16 }
 0x187   : > { %v434_v17 = vpop.trf.xlu0 }
 0x188   : > { %1382 = vmatprep.mubr.msk.f32.mxu0 %vm255_vm1, %v434_v17 }
 0x18b   : > { %v435_v18 = vpop.trf.xlu0 }
 0x18c   : > { %1383 = vmatmul.mubr.msk.f32.gmra.mrb[6].mxu0 %vm255_vm1, %v435_v18 }
 0x18f   : > { %v436_v19 = vpop.trf.xlu0 }
 0x190   : > { %1385 = vmatprep.mubr.msk.f32.mxu0 %vm255_vm1, %v436_v19 }
 0x193   : > { %v437_v20 = vpop.trf.xlu0 }
 0x194   : > { %1386 = vmatmul.mubr.msk.f32.gmra.mrb[8].mxu0 %vm255_vm1, %v437_v20 }
 0x197   : > { %v438_v21 = vpop.trf.xlu0 }
 0x198   : > { %1388 = vmatprep.mubr.msk.f32.mxu0 %vm255_vm1, %v438_v21 }
 0x19b   : > { %v439_v22 = vpop.trf.xlu0 }
 0x19c   : > { %1389 = vmatmul.mubr.msk.f32.gmra.mrb[10].mxu0 %vm255_vm1, %v439_v22 }
 0x19f   : > { %v440_v23 = vpop.trf.xlu0 }
 0x1a0   : > { %1391 = vmatprep.mubr.msk.f32.mxu0 %vm255_vm1, %v440_v23 }
 0x1a3   : > { %v441_v24 = vpop.trf.xlu0 }
 0x1a4   : > { %1392 = vmatmul.mubr.msk.f32.gmra.mrb[12].mxu0 %vm255_vm1, %v441_v24 }
 0x1a7   : > { %v442_v25 = vpop.trf.xlu0 }
 0x1a8   : > { %1394 = vmatprep.mubr.msk.f32.mxu0 %vm255_vm1, %v442_v25 }
 0x1ab   : > { %v443_v26 = vpop.trf.xlu0 }
 0x1ac   : > { %1395 = vmatmul.mubr.msk.f32.gmra.mrb[14].mxu0 %vm255_vm1, %v443_v26 }
 0x1af   : > { %v460_v27 = vpop.trf.xlu0 }
 0x1b0   : > { %1397 = vmatprep.mubr.msk.f32.mxu0 %vm255_vm1, %v460_v27 }
 0x1b3   : > { %v461_v28 = vpop.trf.xlu0 }
 0x1b4   : > { %1398 = vmatmul.mubr.msk.f32.gmra.mrb[16].mxu0 %vm255_vm1, %v461_v28 }
 0x1b7   : > { %v462_v29 = vpop.trf.xlu0 }
 0x1b8   : > { %1400 = vmatprep.mubr.msk.f32.mxu0 %vm255_vm1, %v462_v29 }
 0x1bb   : > { %v463_v30 = vpop.trf.xlu0 }
 0x1bc   : > { %1401 = vmatmul.mubr.msk.f32.gmra.mrb[18].mxu0 %vm255_vm1, %v463_v30 }
 0x1bf   : > { %v464_v31 = vpop.trf.xlu0 }
 0x1c0   : > { %1403 = vmatprep.mubr.msk.f32.mxu0 %vm255_vm1, %v464_v31 }
 0x1c3   : > { %v465_v32 = vpop.trf.xlu0 }
 0x1c4   : > { %1404 = vmatmul.mubr.msk.f32.gmra.mrb[20].mxu0 %vm255_vm1, %v465_v32 }
 0x1c7   : > { %v466_v33 = vpop.trf.xlu0 }
 0x1c8   : > { %1406 = vmatprep.mubr.msk.f32.mxu0 %vm255_vm1, %v466_v33 }
 0x1cb   : > { %v467_v34 = vpop.trf.xlu0 }
 0x1cc   : > { %1407 = vmatmul.mubr.msk.f32.gmra.mrb[22].mxu0 %vm255_vm1, %v467_v34 }
 0x1cf   : > { %v468_v35 = vpop.trf.xlu0 }
 0x1d0   : > { %1409 = vmatprep.mubr.msk.f32.mxu0 %vm255_vm1, %v468_v35 }
 0x1d3   : > { %v469_v36 = vpop.trf.xlu0 }
 0x1d4   : > { %1410 = vmatmul.mubr.msk.f32.gmra.mrb[24].mxu0 %vm255_vm1, %v469_v36 }
 0x1d7   : > { %v470_v37 = vpop.trf.xlu0 }
 0x1d8   : > { %1412 = vmatprep.mubr.msk.f32.mxu0 %vm255_vm1, %v470_v37 }
 0x1db   : > { %v471_v38 = vpop.trf.xlu0 }
 0x1dc   : > { %1413 = vmatmul.mubr.msk.f32.gmra.mrb[26].mxu0 %vm255_vm1, %v471_v38 }
 0x1df   : > { %v472_v39 = vpop.trf.xlu0 }
 0x1e0   : > { %1415 = vmatprep.mubr.msk.f32.mxu0 %vm255_vm1, %v472_v39 }
 0x1e3   : > { %v473_v40 = vpop.trf.xlu0 }
 0x1e4   : > { %1416 = vmatmul.mubr.msk.f32.gmra.mrb[28].mxu0 %vm255_vm1, %v473_v40 }
 0x1e7   : > { %v474_v41 = vpop.trf.xlu0 }
 0x1e8   : > { %1418 = vmatprep.mubr.msk.f32.mxu0 %vm255_vm1, %v474_v41 }
 0x1eb   : > { %v475_v42 = vpop.trf.xlu0 }
 0x1ec   : > { %1419 = vmatmul.mubr.msk.f32.gmra.mrb[30].mxu0 %vm255_vm1, %v475_v42 }
 0x247   : > { %v1375_v43 = vpop.f32.mrb[0].mxu0 }
 0x248   : > { %v638_v44 = vpop.f32.mrb[1].mxu0  ;;  %v1723_v48 = vmul.f32 0.35355338, %v1375_v43 }
 0x249   : > { %v1727_v51 = vmul.f32 0.35355338, %v638_v44 }
 0x24f   : > { %v1378_v45 = vpop.f32.mrb[2].mxu0 }
 0x250   : > { %v648_v46 = vpop.f32.mrb[3].mxu0  ;;  %v1735_v56 = vmul.f32 0.35355338, %v1378_v45 }
 0x251   : > { %v1739_v59 = vmul.f32 0.35355338, %v648_v46 }
 0x257   : > { %v1381_v47 = vpop.f32.mrb[4].mxu0 }
 0x258   : > { %v1725_v49 = vmul.f32 0.35355338, %v1381_v47  ;;  %v658_v50 = vpop.f32.mrb[5].mxu0 }
 0x259   : > { %v1729_v52 = vmul.f32 0.35355338, %v658_v50 }
 0x25a   : > { %v830_v53 = vmax.f32 %v1723_v48, %v1725_v49 }
 0x25b   : > { %v829_v54 = vmax.f32 %v1727_v51, %v1729_v52 }
 0x25f   : > { %v1384_v55 = vpop.f32.mrb[6].mxu0 }
 0x260   : > { %v1737_v57 = vmul.f32 0.35355338, %v1384_v55  ;;  %v668_v58 = vpop.f32.mrb[7].mxu0 }
 0x261   : > { %v1741_v60 = vmul.f32 0.35355338, %v668_v58 }
 0x262   : > { %v832_v61 = vmax.f32 %v1735_v56, %v1737_v57 }
 0x263   : > { %v831_v62 = vmax.f32 %v1739_v59, %v1741_v60 }
 0x267   : > { %v1387_v63 = vpop.f32.mrb[8].mxu0 }
 0x268   : > { %v1747_v1 = vmul.f32 0.35355338, %v1387_v63  ;;  %v678_v2 = vpop.f32.mrb[9].mxu0 }
 0x269   : > { %v1749_v3 = vmul.f32 0.35355338, %v678_v2 }
 0x26a   : > { %v834_v4 = vmax.f32 %v830_v53, %v1747_v1  ;;  %v1795_v53 = vpop.f32.mrb[4].mxu1 }
 0x26b   : > { %v833_v5 = vmax.f32 %v829_v54, %v1749_v3  ;;  %v409_v58 = vpop.f32.mrb[5].mxu1 }
 0x26c   : > { %1063 = vmatprep.mubr.f32.mxu1 %v409_v58 }
 0x26f   : > { %v1390_v6 = vpop.f32.mrb[10].mxu0 }
 0x270   : > { %v1753_v7 = vmul.f32 0.35355338, %v1390_v6  ;;  %v688_v8 = vpop.f32.mrb[11].mxu0 }
 0x271   : > { %v1755_v9 = vmul.f32 0.35355338, %v688_v8 }
 0x272   : > { %v836_v10 = vmax.f32 %v832_v61, %v1753_v7 }
 0x273   : > { %v835_v11 = vmax.f32 %v831_v62, %v1755_v9 }
 0x277   : > { %v1393_v12 = vpop.f32.mrb[12].mxu0 }
 0x278   : > { %v1759_v13 = vmul.f32 0.35355338, %v1393_v12  ;;  %v698_v14 = vpop.f32.mrb[13].mxu0 }
 0x279   : > { %v1761_v15 = vmul.f32 0.35355338, %v698_v14 }
 0x27a   : > { %v838_v16 = vmax.f32 %v834_v4, %v1759_v13 }
 0x27b   : > { %v837_v17 = vmax.f32 %v833_v5, %v1761_v15 }
 0x27f   : > { %v1396_v18 = vpop.f32.mrb[14].mxu0 }
 0x280   : > { %v1765_v19 = vmul.f32 0.35355338, %v1396_v18  ;;  %v708_v20 = vpop.f32.mrb[15].mxu0 }
 0x281   : > { %v1767_v21 = vmul.f32 0.35355338, %v708_v20 }
 0x282   : > { %v840_v22 = vmax.f32 %v836_v10, %v1765_v19 }
 0x283   : > { %v839_v23 = vmax.f32 %v835_v11, %v1767_v21 }
 0x287   : > { %v1399_v24 = vpop.f32.mrb[16].mxu0 }
 0x288   : > { %v1771_v25 = vmul.f32 0.35355338, %v1399_v24  ;;  %v718_v26 = vpop.f32.mrb[17].mxu0 }
 0x289   : > { %v1773_v27 = vmul.f32 0.35355338, %v718_v26 }
 0x28a   : > { %v842_v28 = vmax.f32 %v838_v16, %v1771_v25 }
 0x28b   : > { %v841_v29 = vmax.f32 %v837_v17, %v1773_v27 }
 0x28f   : > { %v1402_v30 = vpop.f32.mrb[18].mxu0 }
 0x290   : > { %v1777_v31 = vmul.f32 0.35355338, %v1402_v30  ;;  %v728_v32 = vpop.f32.mrb[19].mxu0 }
 0x291   : > { %v1779_v33 = vmul.f32 0.35355338, %v728_v32 }
 0x292   : > { %v844_v34 = vmax.f32 %v840_v22, %v1777_v31 }
 0x293   : > { %v843_v35 = vmax.f32 %v839_v23, %v1779_v33 }
 0x297   : > { %v1405_v36 = vpop.f32.mrb[20].mxu0 }
 0x298   : > { %v1783_v37 = vmul.f32 0.35355338, %v1405_v36  ;;  %v738_v38 = vpop.f32.mrb[21].mxu0 }
 0x299   : > { %v1785_v39 = vmul.f32 0.35355338, %v738_v38 }
 0x29a   : > { %v846_v40 = vmax.f32 %v842_v28, %v1783_v37 }
 0x29b   : > { %v845_v41 = vmax.f32 %v841_v29, %v1785_v39 }
 0x29f   : > { %v1408_v42 = vpop.f32.mrb[22].mxu0 }
 0x2a0   : > { %v1789_v43 = vmul.f32 0.35355338, %v1408_v42  ;;  %v748_v44 = vpop.f32.mrb[23].mxu0 }
 0x2a1   : > { %v1791_v45 = vmul.f32 0.35355338, %v748_v44 }
 0x2a2   : > { %v848_v46 = vmax.f32 %v844_v34, %v1789_v43 }
 0x2a3   : > { %v847_v47 = vmax.f32 %v843_v35, %v1791_v45 }
 0x2a7   : > { %v1411_v50 = vpop.f32.mrb[24].mxu0 }
 0x2a8   : > { %v1797_v54 = vmul.f32 0.35355338, %v1411_v50  ;;  %v758_v55 = vpop.f32.mrb[25].mxu0 }
 0x2a9   : > { %v1799_v61 = vmul.f32 0.35355338, %v758_v55 }
 0x2aa   : > { %v850_v62 = vmax.f32 %v846_v40, %v1797_v54 }
 0x2ab   : > { %v849_v63 = vmax.f32 %v845_v41, %v1799_v61 }
 0x2af   : > { %v1414_v2 = vpop.f32.mrb[26].mxu0 }
 0x2b0   : > { %v1803_v4 = vmul.f32 0.35355338, %v1414_v2  ;;  %v768_v5 = vpop.f32.mrb[27].mxu0 }
 0x2b1   : > { %v1805_v6 = vmul.f32 0.35355338, %v768_v5 }
 0x2b2   : > { %v852_v8 = vmax.f32 %v848_v46, %v1803_v4 }
 0x2b3   : > { %v851_v10 = vmax.f32 %v847_v47, %v1805_v6 }
 0x2b7   : > { %v1417_v11 = vpop.f32.mrb[28].mxu0 }
 0x2b8   : > { %v1809_v12 = vmul.f32 0.35355338, %v1417_v11  ;;  %v778_v14 = vpop.f32.mrb[29].mxu0 }
 0x2b9   : > { %v1811_v16 = vmul.f32 0.35355338, %v778_v14 }
 0x2ba   : > { %v854_v17 = vmax.f32 %v850_v62, %v1809_v12 }
 0x2bb   : > { %v853_v18 = vmax.f32 %v849_v63, %v1811_v16 }
 0x2bd   : > { %v857_v20 = vmax.f32 %v853_v18, %v854_v17 }
 0x2bf   : > { %v1420_v22 = vpop.f32.mrb[30].mxu0 }
 0x2c0   : > { %v1815_v23 = vmul.f32 0.35355338, %v1420_v22  ;;  %v788_v24 = vpop.f32.mrb[31].mxu0 }
 0x2c1   : > { %v1817_v26 = vmul.f32 0.35355338, %v788_v24 }
 0x2c2   : > { %v856_v28 = vmax.f32 %v852_v8, %v1815_v23 }
 0x2c3   : > { %v855_v29 = vmax.f32 %v851_v10, %v1817_v26 }
 0x2c5   : > { %v858_v30 = vmax.f32 %v855_v29, %v856_v28 }
 0x2c7   : > { %v859_v32 = vmax.f32 %v857_v20, %v858_v30 }
 0x2c9   : > { %v860_v34 = vrot.slane %v859_v32, 4 }
 0x2cb   : > { %v861_v35 = vmax.f32 %v859_v32, %v860_v34 }
 0x2cd   : > { %v862_v36 = vrot.slane %v861_v35, 2 }
 0x2cf   : > { %v863_v38 = vmax.f32 %v861_v35, %v862_v36 }
 0x2d1   : > { %v864_v40 = vrot.slane %v863_v38, 1 }
 0x2d3   : > { %v1821_v41 = vmax.f32 %v863_v38, %v864_v40 }
 0x2d5   : > { %v866_v42 = vsub.f32 %v1727_v51, %v1821_v41  ;;  %v867_v44 = vsub.f32 %v1723_v48, %v1821_v41  ;;  %v868_v46 = vsub.f32 %v1739_v59, %v1821_v41  ;;  %v869_v47 = vsub.f32 %v1735_v56, %v1821_v41 }
 0x2d6   : > { %v870_v50 = vsub.f32 %v1729_v52, %v1821_v41  ;;  %v871_v55 = vsub.f32 %v1725_v49, %v1821_v41  ;;  %v872_v58 = vsub.f32 %v1741_v60, %v1821_v41  ;;  %v873_v51 = vsub.f32 %v1737_v57, %v1821_v41 }
 0x2d7   : > { %v874_v48 = vsub.f32 %v1749_v3, %v1821_v41  ;;  %v875_v59 = vsub.f32 %v1747_v1, %v1821_v41  ;;  %v876_v56 = vsub.f32 %v1755_v9, %v1821_v41  ;;  %v877_v52 = vsub.f32 %v1753_v7, %v1821_v41 }
 0x2d8   : > { %v878_v49 = vsub.f32 %v1761_v15, %v1821_v41  ;;  %v879_v60 = vsub.f32 %v1759_v13, %v1821_v41  ;;  %v880_v57 = vsub.f32 %v1767_v21, %v1821_v41  ;;  %v881_v3 = vsub.f32 %v1765_v19, %v1821_v41 }
 0x2d9   : > { %v882_v1 = vsub.f32 %v1773_v27, %v1821_v41  ;;  %v883_v9 = vsub.f32 %v1771_v25, %v1821_v41  ;;  %v884_v7 = vsub.f32 %v1779_v33, %v1821_v41  ;;  %v885_v15 = vsub.f32 %v1777_v31, %v1821_v41 }
 0x2da   : > { %v886_v13 = vsub.f32 %v1785_v39, %v1821_v41  ;;  %v887_v21 = vsub.f32 %v1783_v37, %v1821_v41  ;;  %v888_v19 = vsub.f32 %v1791_v45, %v1821_v41  ;;  %v889_v27 = vsub.f32 %v1789_v43, %v1821_v41 }
 0x2db   : > { %v890_v25 = vsub.f32 %v1799_v61, %v1821_v41  ;;  %v891_v33 = vsub.f32 %v1797_v54, %v1821_v41  ;;  %v892_v31 = vsub.f32 %v1805_v6, %v1821_v41  ;;  %v893_v39 = vsub.f32 %v1803_v4, %v1821_v41 }
 0x2dc   : > { %v894_v62 = vsub.f32 %v1811_v16, %v1821_v41  ;;  %v895_v63 = vsub.f32 %v1809_v12, %v1821_v41  ;;  %v896_v2 = vsub.f32 %v1817_v26, %v1821_v41  ;;  %v897_v5 = vsub.f32 %v1815_v23, %v1821_v41 }
 0x2dd   : > { %v898_v8 = vmul.f32 1.442695, %v866_v42  ;;  %v900_v10 = vmul.f32 1.442695, %v867_v44  ;;  %v902_v11 = vmul.f32 1.442695, %v868_v46 }
 0x2de   : > { %v904_v14 = vmul.f32 1.442695, %v869_v47  ;;  %v906_v17 = vmul.f32 1.442695, %v870_v50  ;;  %v908_v18 = vmul.f32 1.442695, %v871_v55 }
 0x2df   : > { %1500 = vpow2.f32 %v898_v8  ;;  %v910_v20 = vmul.f32 1.442695, %v872_v58  ;;  %v912_v22 = vmul.f32 1.442695, %v873_v51  ;;  %v914_v24 = vmul.f32 1.442695, %v874_v48 }
 0x2e0   : > { %1502 = vpow2.f32 %v900_v10  ;;  %v916_v28 = vmul.f32 1.442695, %v875_v59  ;;  %v918_v29 = vmul.f32 1.442695, %v876_v56  ;;  %v920_v30 = vmul.f32 1.442695, %v877_v52 }
 0x2e1   : > { %1504 = vpow2.f32 %v902_v11  ;;  %v922_v32 = vmul.f32 1.442695, %v878_v49  ;;  %v924_v34 = vmul.f32 1.442695, %v879_v60  ;;  %v926_v36 = vmul.f32 1.442695, %v880_v57 }
 0x2e2   : > { %1506 = vpow2.f32 %v904_v14  ;;  %v928_v40 = vmul.f32 1.442695, %v881_v3  ;;  %v930_v44 = vmul.f32 1.442695, %v882_v1  ;;  %v932_v55 = vmul.f32 1.442695, %v883_v9 }
 0x2e3   : > { %1508 = vpow2.f32 %v906_v17  ;;  %v934_v51 = vmul.f32 1.442695, %v884_v7  ;;  %v936_v52 = vmul.f32 1.442695, %v885_v15  ;;  %v938_v60 = vmul.f32 1.442695, %v886_v13 }
 0x2e4   : > { %1510 = vpow2.f32 %v908_v18  ;;  %v940_v9 = vmul.f32 1.442695, %v887_v21  ;;  %v942_v15 = vmul.f32 1.442695, %v888_v19  ;;  %v944_v37 = vmul.f32 1.442695, %v889_v27 }
 0x2e5   : > { %1512 = vpow2.f32 %v910_v20  ;;  %v946_v45 = vmul.f32 1.442695, %v890_v25  ;;  %v948_v43 = vmul.f32 1.442695, %v891_v33  ;;  %v950_v61 = vmul.f32 1.442695, %v892_v31 }
 0x2e6   : > { %1514 = vpow2.f32 %v912_v22  ;;  %v952_v54 = vmul.f32 1.442695, %v893_v39  ;;  %v954_v6 = vmul.f32 1.442695, %v894_v62  ;;  %v956_v4 = vmul.f32 1.442695, %v895_v63 }
 0x2e7   : > { %1516 = vpow2.f32 %v914_v24  ;;  %v958_v24 = vmul.f32 1.442695, %v896_v2 }
 0x2e8   : > { %1518 = vpow2.f32 %v916_v28 }
 0x2e9   : > { %v1887_v35 = vpop.eup %1500  ;;  %1520 = vpow2.f32 %v918_v29  ;;  %v960_v29 = vmul.f32 1.442695, %v897_v5 }
 0x2ea   : > { %v1889_v38 = vpop.eup %1502  ;;  %1522 = vpow2.f32 %v920_v30 }
 0x2eb   : > { %v1891_v42 = vpop.eup %1504  ;;  %1524 = vpow2.f32 %v922_v32  ;;  %v962_v46 = vadd.f32 %v1889_v38, %v1887_v35  ;;  %v1428_v47 = vpack.c.bf16 %v1889_v38, %v1887_v35 }
 0x2ec   : > { %v1897_v50 = vpop.eup %1506  ;;  %1526 = vpow2.f32 %v924_v34 }
 0x2ed   : > { %v1899_v58 = vpop.eup %1508  ;;  %1528 = vpow2.f32 %v926_v36  ;;  %v963_v48 = vadd.f32 %v1891_v42, %v962_v46  ;;  %v1432_v59 = vpack.c.bf16 %v1897_v50, %v1891_v42 }
 0x2ee   : > { %v1904_v56 = vpop.eup %1510  ;;  %1530 = vpow2.f32 %v928_v40 }
 0x2ef   : > { %v1906_v49 = vpop.eup %1512  ;;  %1532 = vpow2.f32 %v930_v44  ;;  %v964_v57 = vadd.f32 %v1897_v50, %v963_v48  ;;  %v1436_v3 = vpack.c.bf16 %v1904_v56, %v1899_v58 }
 0x2f0   : > { %v1911_v1 = vpop.eup %1514  ;;  %1534 = vpow2.f32 %v932_v55 }
 0x2f1   : > { %v1916_v7 = vpop.eup %1516  ;;  %1536 = vpow2.f32 %v934_v51  ;;  %v965_v13 = vadd.f32 %v1899_v58, %v964_v57  ;;  %v1440_v8 = vpack.c.bf16 %v1911_v1, %v1906_v49 }
 0x2f2   : > { %v1924_v10 = vpop.eup %1518  ;;  %1538 = vpow2.f32 %v936_v52 }
 0x2f3   : > { %v1929_v21 = vpop.eup %1520  ;;  %1540 = vpow2.f32 %v938_v60  ;;  %v966_v19 = vadd.f32 %v1904_v56, %v965_v13  ;;  %v1444_v11 = vpack.c.bf16 %v1924_v10, %v1916_v7 }
 0x2f4   : > { %v1937_v14 = vpop.eup %1522  ;;  %1542 = vpow2.f32 %v940_v9 }
 0x2f5   : > { %v1942_v27 = vpop.eup %1524  ;;  %1544 = vpow2.f32 %v942_v15  ;;  %v967_v25 = vadd.f32 %v1906_v49, %v966_v19  ;;  %v1448_v17 = vpack.c.bf16 %v1937_v14, %v1929_v21 }
 0x2f6   : > { %v1950_v18 = vpop.eup %1526  ;;  %1546 = vpow2.f32 %v944_v37 }
 0x2f7   : > { %v1955_v33 = vpop.eup %1528  ;;  %1548 = vpow2.f32 %v946_v45  ;;  %v968_v31 = vadd.f32 %v1911_v1, %v967_v25  ;;  %v1452_v20 = vpack.c.bf16 %v1950_v18, %v1942_v27 }
 0x2f8   : > { %v1963_v22 = vpop.eup %1530  ;;  %1550 = vpow2.f32 %v948_v43 }
 0x2f9   : > { %v1533_v39 = vpop.eup %1532  ;;  %1552 = vpow2.f32 %v950_v61  ;;  %v969_v16 = vadd.f32 %v1916_v7, %v968_v31  ;;  %v1456_v62 = vpack.c.bf16 %v1963_v22, %v1955_v33 }
 0x2fa   : > { %v1535_v28 = vpop.eup %1534  ;;  %1554 = vpow2.f32 %v952_v54 }
 0x2fb   : > { %v1537_v30 = vpop.eup %1536  ;;  %1556 = vpow2.f32 %v954_v6  ;;  %v970_v12 = vadd.f32 %v1924_v10, %v969_v16  ;;  %v1426_v63 = vpack.c.bf16 %v1535_v28, %v1533_v39 }
 0x2fc   : > { %v1539_v32 = vpop.eup %1538  ;;  %1558 = vpow2.f32 %v956_v4 }
 0x2fd   : > { %v1541_v26 = vpop.eup %1540  ;;  %1560 = vpow2.f32 %v958_v24  ;;  %v971_v2 = vadd.f32 %v1929_v21, %v970_v12  ;;  %1427 = vmatprep.subr.bf16.mxu1 %v1426_v63  ;;  %v1430_v34 = vpack.c.bf16 %v1539_v32, %v1537_v30 }
 0x2fe   : > { %v1543_v36 = vpop.eup %1542  ;;  %1562 = vpow2.f32 %v960_v29  ;;  %1429 = vmatpush3.bf16.msra.mxu1 %v1428_v47 }
 0x2ff   : > { %v1545_v23 = vpop.eup %1544  ;;  %v972_v41 = vadd.f32 %v1937_v14, %v971_v2  ;;  %1431 = vmatprep.subr.bf16.mxu1 %v1430_v34  ;;  %v1434_v5 = vpack.c.bf16 %v1543_v36, %v1541_v26 }
 0x300   : > { %v1547_v40 = vpop.eup %1546 }
 0x301   : > { %v1549_v44 = vpop.eup %1548  ;;  %v973_v46 = vadd.f32 %v1942_v27, %v972_v41  ;;  %v1438_v55 = vpack.c.bf16 %v1547_v40, %v1545_v23 }
 0x302   : > { %v1551_v51 = vpop.eup %1550  ;;  %1433 = vmatpush3.bf16.msra.mxu1 %v1432_v59 }
 0x303   : > { %v1553_v48 = vpop.eup %1552  ;;  %v974_v52 = vadd.f32 %v1950_v18, %v973_v46  ;;  %1435 = vmatprep.subr.bf16.mxu1 %v1434_v5  ;;  %v1442_v35 = vpack.c.bf16 %v1551_v51, %v1549_v44  ;;  %v1069_v18 = vld [vmem:[%s2036_s3] sm:$0xff] }
 0x304   : > { %v1555_v38 = vpop.eup %1554 }
 0x305   : > { %v1557_v47 = vpop.eup %1556  ;;  %v975_v60 = vadd.f32 %v1955_v33, %v974_v52  ;;  %v1446_v57 = vpack.c.bf16 %v1555_v38, %v1553_v48 }
 0x306   : > { %v1559_v9 = vpop.eup %1558  ;;  %1437 = vmatpush3.bf16.msra.mxu1 %v1436_v3 }
 0x307   : > { %v1561_v15 = vpop.eup %1560  ;;  %v976_v13 = vadd.f32 %v1963_v22, %v975_v60  ;;  %1439 = vmatprep.subr.bf16.mxu1 %v1438_v55  ;;  %v1450_v42 = vpack.c.bf16 %v1559_v9, %v1557_v47 }
 0x308   : > { %v1563_v50 = vpop.eup %1562 }
 0x309   : > { %v977_v59 = vadd.f32 %v1533_v39, %v976_v13  ;;  %v1454_v37 = vpack.c.bf16 %v1563_v50, %v1561_v15 }
 0x30a   : > { %1441 = vmatpush3.bf16.msra.mxu1 %v1440_v8 }
 0x30b   : > { %v978_v45 = vadd.f32 %v1535_v28, %v977_v59  ;;  %1443 = vmatprep.subr.bf16.mxu1 %v1442_v35 }
 0x30d   : > { %v979_v19 = vadd.f32 %v1537_v30, %v978_v45 }
 0x30e   : > { %1445 = vmatpush3.bf16.msra.mxu1 %v1444_v11 }
 0x30f   : > { %v980_v58 = vadd.f32 %v1539_v32, %v979_v19  ;;  %1447 = vmatprep.subr.bf16.mxu1 %v1446_v57 }
 0x311   : > { %v981_v56 = vadd.f32 %v1541_v26, %v980_v58 }
 0x312   : > { %1449 = vmatpush3.bf16.msra.mxu1 %v1448_v17 }
 0x313   : > { %v982_v3 = vadd.f32 %v1543_v36, %v981_v56  ;;  %1451 = vmatprep.subr.bf16.mxu1 %v1450_v42 }
 0x315   : > { %v983_v43 = vadd.f32 %v1545_v23, %v982_v3 }
 0x316   : > { %1453 = vmatpush3.bf16.msra.mxu1 %v1452_v20 }
 0x317   : > { %v984_v49 = vadd.f32 %v1547_v40, %v983_v43  ;;  %1455 = vmatprep.subr.bf16.mxu1 %v1454_v37 }
 0x319   : > { %v985_v1 = vadd.f32 %v1549_v44, %v984_v49 }
 0x31a   : > { %1457 = vmatpush3.bf16.msra.mxu1 %v1456_v62 }
 0x31b   : > { %v986_v7 = vadd.f32 %v1551_v51, %v985_v1  ;;  %1421 = vmatprep.subr.mxu1 %v1606_v0 }
 0x31d   : > { %v987_v8 = vadd.f32 %v1553_v48, %v986_v7  ;;  %1064 = vmatmul.mubr.f32.vlgmr.msra.gmra.mrb[6].mxu1 %v1795_v53 }
 0x31e   : > { %1423 = vmatprep.mubr.msk.f32.mxu1 %vm1607_vm0, %v1606_v0 }
 0x31f   : > { %v988_v10 = vadd.f32 %v1555_v38, %v987_v8 }
 0x321   : > { %v989_v21 = vadd.f32 %v1557_v47, %v988_v10 }
 0x323   : > { %v990_v11 = vadd.f32 %v1559_v9, %v989_v21 }
 0x325   : > { %v991_v14 = vadd.f32 %v1561_v15, %v990_v11 }
 0x327   : > { %v992_v27 = vadd.f32 %v1563_v50, %v991_v14 }
 0x329   : > { %v993_v53 = vrot.slane %v992_v27, 4 }
 0x32b   : > { %v994_v54 = vadd.f32 %v993_v53, %v992_v27 }
 0x32d   : > { %v995_v33 = vrot.slane %v994_v54, 2 }
 0x32f   : > { %v996_v0 = vadd.f32 %v995_v33, %v994_v54 }
 0x331   : > { %v997_v6 = vrot.slane %v996_v0, 1 }
 0x333   : > { %v998_v31 = vadd.f32 %v997_v6, %v996_v0 }
 0x335   : > { %1564 = vrcp.f32 %v998_v31 }
 0x33f   : > { %v1565_v20 = vpop.eup %1564 }
 0x3f0   : > { %v1361_v61 = vpop.f32.mrb[6].mxu1 }
 0x3f1   : > { %v1362_v25 = vpop.f32.mrb[7].mxu1 }
 0x3f2   : > { %v1363_v17 = vadd.f32 %v1362_v25, %v1361_v61 }
 0x3f4   : > { %1422 = vmatpush3.msra.mxu1 %v1363_v17 }
 0x3f5   : > { %1424 = vmatmul.mubr.msk.f32.vlgmr.msra.gmra.mrb[8].mxu1 %vm255_vm1, %v1069_v18 }
 0x4c8   : > { %v1139_v22 = vpop.f32.mrb[8].mxu1 }
 0x4c9   : > { %v1144_v4 = vmul.f32 %v1565_v20, %v1139_v22  ;;  %v1425_v39 = vpop.f32.mrb[9].mxu1 }
 0x4cb   : > { %1145 = vst [vmem:[%s248_s16] sm:$0xff] %v1144_v4 }
 0x4cc PF: > { %s14_s19 = sadd.s32 1, %s1604_s19   ;;  %s2038_s15 = smov %s1596_s17 }
 0x4cd   : > { %p11_p7 = scmp.ge.s32.totalorder %s14_s19, 6   ;;  %s2039_s16 = smov %s1600_s18 }
 0x4ce   : > { %s2040_s17 = smov %s2043_s20  ;;  %s2041_s18 = smov %s2047_s21 }
 0x4cf   :  { %13 = sbr.rel (!%p11_p7) target bundleno = 3 (0x3), region = 69 }

</bundles_post_ra>
